<compile_context>
chip_gen: v6e
topology: v6e:2x2x1
jax: 0.10.0
libtpu: 0.0.40
codegen_flags: <defaults>
</compile_context>

<pallas_src>
import functools

import jax
import jax.numpy as jnp
from jax import lax
from jax.experimental import pallas as pl
from jax.experimental.pallas import tpu as pltpu

LANE = 128
_VMEM = pl.BlockSpec(memory_space=pltpu.MemorySpace.VMEM)


def _round_up(x, m):
    return ((x + m - 1) // m) * m


# ----------------------------- kernel bodies -------------------------------

def _encode(adj_ref, x_ref, w0_ref, b0_ref, w1_ref, b1_ref, *,
            hidden_p, out_p, compute_dtype):
    """Fused 2-layer GraphSAGE encoder; returns f32 embeddings [N, out_p].

    Weights arrive already in compute_dtype (pre-cast at param-prep time).
    Adjacency contractions run with f32 operands for accuracy (review item).
    """
    cdt = compute_dtype
    adj = adj_ref[...]                    # f32 — kept f32 for the NxN contractions
    x = x_ref[...].astype(cdt)            # single small cast of node features
    b0 = b0_ref[...]                      # f32 biases (hoisted reads)
    b1 = b1_ref[...]

    # Layer 1: H = relu(X @ W_self0 + A @ (X @ W_neigh0) + b0)
    # Single merged projection: X @ [W_self0 | W_neigh0] -> [N, 2*hidden_p].
    proj = jnp.dot(x, w0_ref[...], preferred_element_type=jnp.float32)
    h = (proj[:, :hidden_p]
         + jnp.dot(adj, proj[:, hidden_p:], preferred_element_type=jnp.float32)
         + b0)
    h = jnp.maximum(h, 0.0)               # f32 epilogue (v5e-friendly)

    # Layer 2 (no relu): emb = H @ W_self1 + A @ (H @ W_neigh1) + b1
    proj = jnp.dot(h.astype(cdt), w1_ref[...], preferred_element_type=jnp.float32)
    emb = (proj[:, :out_p]
           + jnp.dot(adj, proj[:, out_p:], preferred_element_type=jnp.float32)
           + b1)
    return emb


def _scores_from_emb(emb, num_query, num_candidate):
    """Inner-product decode on the f32-accumulated embeddings (no casts,
    contracts the lane dims directly — no transpose / XLU relayout)."""
    q = emb[:num_query]
    c = emb[num_query:num_query + num_candidate]
    return lax.dot_general(q, c, (((1,), (1,)), ((), ())),
                           preferred_element_type=jnp.float32)


def _encoder_kernel(adj_ref, x_ref, w0_ref, b0_ref, w1_ref, b1_ref, emb_ref, *,
                    hidden_p, out_p, compute_dtype):
    emb = _encode(adj_ref, x_ref, w0_ref, b0_ref, w1_ref, b1_ref,
                  hidden_p=hidden_p, out_p=out_p, compute_dtype=compute_dtype)
    emb_ref[...] = emb.astype(emb_ref.dtype)   # lane-dense (out_p = 128) store


def _encoder_decode_kernel(adj_ref, x_ref, w0_ref, b0_ref, w1_ref, b1_ref,
                           emb_ref, scores_ref, *,
                           hidden_p, out_p, num_query, num_candidate,
                           compute_dtype):
    emb = _encode(adj_ref, x_ref, w0_ref, b0_ref, w1_ref, b1_ref,
                  hidden_p=hidden_p, out_p=out_p, compute_dtype=compute_dtype)
    emb_ref[...] = emb.astype(emb_ref.dtype)
    scores_ref[...] = _scores_from_emb(emb, num_query, num_candidate).astype(
        scores_ref.dtype)


def _encoder_decode_scores_only_kernel(adj_ref, x_ref, w0_ref, b0_ref, w1_ref,
                                       b1_ref, scores_ref, *,
                                       hidden_p, out_p, num_query,
                                       num_candidate, compute_dtype):
    # Embeddings never leave vregs/VMEM: no (N, 128) HBM writeback.
    emb = _encode(adj_ref, x_ref, w0_ref, b0_ref, w1_ref, b1_ref,
                  hidden_p=hidden_p, out_p=out_p, compute_dtype=compute_dtype)
    scores_ref[...] = _scores_from_emb(emb, num_query, num_candidate).astype(
        scores_ref.dtype)


def _decode_kernel(q_ref, c_ref, o_ref):
    # f32 inner product; consumes lane-dense padded embeddings (zero lanes
    # contribute nothing).
    o_ref[...] = lax.dot_general(
        q_ref[...], c_ref[...], (((1,), (1,)), ((), ())),
        preferred_element_type=jnp.float32).astype(o_ref.dtype)


# ----------------------------- JAX wrappers --------------------------------

def _prepare_params(params, compute_dtype):
    """Merge [W_self | W_neigh] per layer, zero-pad feature dims to 128 lanes,
    and pre-cast weights to compute_dtype (biases stay f32)."""
    in_dim, hidden = params["w_self_0"].shape
    out_dim = params["w_self_1"].shape[1]
    hp = _round_up(hidden, LANE)
    op = _round_up(out_dim, LANE)

    def pad(w, rows, cols):
        return jnp.pad(w, ((0, rows - w.shape[0]), (0, cols - w.shape[1])))

    w0 = jnp.concatenate([pad(params["w_self_0"], in_dim, hp),
                          pad(params["w_neigh_0"], in_dim, hp)], axis=1)
    w1 = jnp.concatenate([pad(params["w_self_1"], hidden, op),
                          pad(params["w_neigh_1"], hidden, op)], axis=1)
    w1 = pad(w1, hp, 2 * op)   # pad K rows so layer-2 contraction is hp-deep

    return {
        "w0": w0.astype(compute_dtype),
        "b0": pad(params["b_0"], 1, hp).astype(jnp.float32),
        "w1": w1.astype(compute_dtype),
        "b1": pad(params["b_1"], 1, op).astype(jnp.float32),
        "hidden_p": hp,
        "out_p": op,
        "out_dim": out_dim,
    }


def fused_encoder(adj, x, prep, *, compute_dtype):
    n = x.shape[0]
    return pl.pallas_call(
        functools.partial(_encoder_kernel, hidden_p=prep["hidden_p"],
                          out_p=prep["out_p"], compute_dtype=compute_dtype),
        out_shape=jax.ShapeDtypeStruct((n, prep["out_p"]), jnp.float32),
        in_specs=[_VMEM] * 6,
        out_specs=_VMEM,
    )(adj, x, prep["w0"], prep["b0"], prep["w1"], prep["b1"])


def fused_encoder_decode(adj, x, prep, num_query, num_candidate, *,
                         compute_dtype, return_embeddings=True):
    n = x.shape[0]
    assert num_query + num_candidate <= n, (
        "num_query + num_candidate must not exceed the number of nodes")
    common = dict(hidden_p=prep["hidden_p"], out_p=prep["out_p"],
                  num_query=num_query, num_candidate=num_candidate,
                  compute_dtype=compute_dtype)
    args = (adj, x, prep["w0"], prep["b0"], prep["w1"], prep["b1"])
    if return_embeddings:
        return pl.pallas_call(
            functools.partial(_encoder_decode_kernel, **common),
            out_shape=(jax.ShapeDtypeStruct((n, prep["out_p"]), jnp.float32),
                       jax.ShapeDtypeStruct((num_query, num_candidate),
                                            jnp.float32)),
            in_specs=[_VMEM] * 6,
            out_specs=(_VMEM, _VMEM),
        )(*args)
    return pl.pallas_call(
        functools.partial(_encoder_decode_scores_only_kernel, **common),
        out_shape=jax.ShapeDtypeStruct((num_query, num_candidate), jnp.float32),
        in_specs=[_VMEM] * 6,
        out_specs=_VMEM,
    )(*args)


def decode(query_embeddings, candidate_embeddings):
    nq = query_embeddings.shape[0]
    nc = candidate_embeddings.shape[0]
    return pl.pallas_call(
        _decode_kernel,
        out_shape=jax.ShapeDtypeStruct((nq, nc), jnp.float32),
        in_specs=[_VMEM, _VMEM],
        out_specs=_VMEM,
    )(query_embeddings, candidate_embeddings)


class LinkPredictionGNN:
    """JAX/Pallas port of gigl.module.models.LinkPredictionGNN.

    Encoder: 2-layer GraphSAGE-like GNN over a dense row-normalized adjacency.
    Decoder: inner-product LinkPredictionDecoder.

    forward()/forward_and_decode() return the lane-dense, zero-padded
    (N, out_p) embedding slab (out_p = round_up(out_dim, 128)); the true
    embedding width is `self.out_dim`. Keeping the padded layout avoids an
    extra wrapper-side slice op and keeps downstream decode() layout-clean.
    """

    def __init__(self, params, compute_dtype=jnp.bfloat16):
        # compute_dtype: MXU operand dtype for the dense projections
        # (bf16 for v6e/v7x throughput; jnp.float32 for exact f32 math).
        # Adjacency contractions always run with f32 operands.
        self.params = params
        self.compute_dtype = compute_dtype
        self._prep = _prepare_params(params, compute_dtype)
        self.out_dim = self._prep["out_dim"]
        self.out_p = self._prep["out_p"]

    def forward(self, x, adj):
        # Homogeneous path of the PyTorch forward(): encoder(data) -> embeddings.
        return fused_encoder(adj, x, self._prep, compute_dtype=self.compute_dtype)
        # TODO(synk): heterogeneous (HeteroData) branch with per-node-type
        # encoders is config-dependent and not reproduced here.

    def decode(self, query_embeddings, candidate_embeddings):
        # Prefer passing the padded (.., out_p) embeddings for lane-dense loads.
        return decode(query_embeddings, candidate_embeddings)

    def forward_and_decode(self, x, adj, num_query, num_candidate, *,
                           return_embeddings=True):
        """Fully fused path: encoder (2 layers) + decoder in ONE pallas_call.

        return_embeddings=False skips the (N, out_p) HBM writeback entirely
        and returns only the (num_query, num_candidate) score matrix.
        """
        return fused_encoder_decode(
            adj, x, self._prep, num_query, num_candidate,
            compute_dtype=self.compute_dtype,
            return_embeddings=return_embeddings)


# ----------------------------- references -----------------------------------

def _ref_encode_matched(x, adj, prep, dtype):
    """Plain-JAX reference mirroring the kernel's op order and operand dtypes."""
    hp, op = prep["hidden_p"], prep["out_p"]
    proj = jnp.dot(x.astype(dtype), prep["w0"], preferred_element_type=jnp.float32)
    h = jnp.maximum(
        proj[:, :hp]
        + jnp.dot(adj, proj[:, hp:], preferred_element_type=jnp.float32)
        + prep["b0"], 0.0)
    proj = jnp.dot(h.astype(dtype), prep["w1"], preferred_element_type=jnp.float32)
    return (proj[:, :op]
            + jnp.dot(adj, proj[:, op:], preferred_element_type=jnp.float32)
            + prep["b1"])


def _ref_encode_f32(x, adj, p):
    """Mathematical f32 reference (original un-merged / un-reordered form)."""
    h = jnp.maximum(adj @ x @ p["w_neigh_0"] + x @ p["w_self_0"] + p["b_0"], 0.0)
    return adj @ h @ p["w_neigh_1"] + h @ p["w_self_1"] + p["b_1"]


def _make_params(key, in_dim, hidden_dim, out_dim):
    ks = jax.random.split(key, 4)
    scale0 = 1.0 / jnp.sqrt(in_dim)
    scale1 = 1.0 / jnp.sqrt(hidden_dim)
    return {
        "w_self_0":  jax.random.normal(ks[0], (in_dim, hidden_dim), jnp.float32) * scale0,
        "w_neigh_0": jax.random.normal(ks[1], (in_dim, hidden_dim), jnp.float32) * scale0,
        "b_0":       jnp.zeros((1, hidden_dim), jnp.float32),
        "w_self_1":  jax.random.normal(ks[2], (hidden_dim, out_dim), jnp.float32) * scale1,
        "w_neigh_1": jax.random.normal(ks[3], (hidden_dim, out_dim), jnp.float32) * scale1,
        "b_1":       jnp.zeros((1, out_dim), jnp.float32),
    }


# ----------------------------- driver ---------------------------------------

if __name__ == "__main__":
    key = jax.random.PRNGKey(0)
    k_feat, k_adj, k_params = jax.random.split(key, 3)

    num_nodes = 64
    in_dim = 32
    hidden_dim = 32
    out_dim = 16
    num_query = 8
    num_candidate = 8

    # Deterministic node features.
    x = jax.random.normal(k_feat, (num_nodes, in_dim), jnp.float32)

    # Deterministic random graph -> dense row-normalized adjacency (+ self loops).
    edge_prob = jax.random.uniform(k_adj, (num_nodes, num_nodes))
    adj_bin = (edge_prob < 0.1).astype(jnp.float32)
    adj_bin = jnp.minimum(adj_bin + jnp.eye(num_nodes, dtype=jnp.float32), 1.0)
    deg = jnp.sum(adj_bin, axis=1, keepdims=True)
    adj = adj_bin / jnp.maximum(deg, 1.0)

    params = _make_params(k_params, in_dim, hidden_dim, out_dim)
    model = LinkPredictionGNN(params)          # bf16 projections, f32 adjacency/acc

    # Fully fused path: encoder (2 layers) + decode in ONE pallas_call.
    emb_p, scores = model.forward_and_decode(x, adj, num_query, num_candidate)
    emb_p = jax.block_until_ready(emb_p)
    scores = jax.block_until_ready(scores)
    assert emb_p.shape == (num_nodes, model.out_p)
    assert scores.shape == (num_query, num_candidate)

    # Scores-only fused path: no (N, out_p) embedding writeback at all.
    scores_only = model.forward_and_decode(
        x, adj, num_query, num_candidate, return_embeddings=False)
    scores_only = jax.block_until_ready(scores_only)
    assert scores_only.shape == (num_query, num_candidate)

    # Module-interface path (forward() then decode(), two pallas_calls).
    # decode() consumes the lane-dense padded embeddings directly.
    emb2_p = model.forward(x, adj)
    scores2 = model.decode(emb2_p[:num_query],
                           emb2_p[num_query:num_query + num_candidate])
    emb2_p = jax.block_until_ready(emb2_p)
    scores2 = jax.block_until_ready(scores2)

    # Correctness vs. a precision-matched plain-JAX reference.
    ref_emb_p = _ref_encode_matched(x, adj, model._prep, model.compute_dtype)
    ref_scores = jnp.dot(
        ref_emb_p[:num_query],
        ref_emb_p[num_query:num_query + num_candidate].T,
        preferred_element_type=jnp.float32)
    assert jnp.allclose(emb_p, ref_emb_p, atol=1e-2, rtol=1e-2)
    assert jnp.allclose(scores, ref_scores, atol=1e-2, rtol=1e-2)
    assert jnp.allclose(scores_only, scores, atol=1e-5, rtol=1e-5)
    assert jnp.allclose(emb2_p, emb_p, atol=1e-2, rtol=1e-2)
    assert jnp.allclose(scores2, scores, atol=1e-2, rtol=1e-2)

    # Sanity check against the exact-f32 mathematical reference (projections
    # run with bf16 operands by default, so allow bf16-level error).
    ref_f32 = _ref_encode_f32(x, adj, params)
    assert jnp.allclose(emb_p[:, :out_dim], ref_f32, atol=0.25, rtol=0.1)

    print("KERNEL_OK")
</pallas_src>

<mosaic_0001>
module attributes {stable_mosaic.version = 11 : i64} {
  func.func @_encoder_decode_kernel(%arg0: memref<64x64xf32, #tpu.memory_space<vmem>>, %arg1: memref<64x32xf32, #tpu.memory_space<vmem>>, %arg2: memref<32x256xbf16, #tpu.memory_space<vmem>>, %arg3: memref<1x128xf32, #tpu.memory_space<vmem>>, %arg4: memref<128x256xbf16, #tpu.memory_space<vmem>>, %arg5: memref<1x128xf32, #tpu.memory_space<vmem>>, %arg6: memref<64x128xf32, #tpu.memory_space<vmem>>, %arg7: memref<8x8xf32, #tpu.memory_space<vmem>>) attributes {dimension_semantics = [], scalar_prefetch = 0 : i64, scratch_operands = 0 : i64, tpu.core_type = #tpu.core_type<tc>} {
    %c0 = arith.constant 0 : index
    %c0_0 = arith.constant 0 : index
    %0 = vector.load %arg0[%c0, %c0_0] : memref<64x64xf32, #tpu.memory_space<vmem>>, vector<64x64xf32>
    %c0_1 = arith.constant 0 : index
    %c0_2 = arith.constant 0 : index
    %1 = vector.load %arg1[%c0_1, %c0_2] : memref<64x32xf32, #tpu.memory_space<vmem>>, vector<64x32xf32>
    %2 = arith.truncf %1 : vector<64x32xf32> to vector<64x32xbf16>
    %c0_3 = arith.constant 0 : index
    %c0_4 = arith.constant 0 : index
    %3 = vector.load %arg3[%c0_3, %c0_4] : memref<1x128xf32, #tpu.memory_space<vmem>>, vector<1x128xf32>
    %c0_5 = arith.constant 0 : index
    %c0_6 = arith.constant 0 : index
    %4 = vector.load %arg5[%c0_5, %c0_6] : memref<1x128xf32, #tpu.memory_space<vmem>>, vector<1x128xf32>
    %c0_7 = arith.constant 0 : index
    %c0_8 = arith.constant 0 : index
    %5 = vector.load %arg2[%c0_7, %c0_8] : memref<32x256xbf16, #tpu.memory_space<vmem>>, vector<32x256xbf16>
    %cst = arith.constant dense<0.000000e+00> : vector<64x256xf32>
    %6 = tpu.matmul %2, %5, %cst {dimension_numbers = #tpu.dot_dimension_numbers<[1], [0], [0], [1], [0, 0, 1, 1], [], []>} : vector<64x32xbf16>, vector<32x256xbf16>, vector<64x256xf32> -> vector<64x256xf32>
    %7 = vector.extract_strided_slice %6 {offsets = [0, 0], sizes = [64, 128], strides = [1, 1]} : vector<64x256xf32> to vector<64x128xf32>
    %8 = vector.extract_strided_slice %6 {offsets = [0, 128], sizes = [64, 128], strides = [1, 1]} : vector<64x256xf32> to vector<64x128xf32>
    %cst_9 = arith.constant dense<0.000000e+00> : vector<64x128xf32>
    %9 = tpu.matmul %0, %8, %cst_9 {dimension_numbers = #tpu.dot_dimension_numbers<[1], [0], [0], [1], [0, 0, 1, 1], [], []>} : vector<64x64xf32>, vector<64x128xf32>, vector<64x128xf32> -> vector<64x128xf32>
    %10 = arith.addf %7, %9 : vector<64x128xf32>
    %11 = vector.broadcast %3 : vector<1x128xf32> to vector<64x128xf32>
    %12 = arith.addf %10, %11 : vector<64x128xf32>
    %cst_10 = arith.constant 0.000000e+00 : f32
    %13 = vector.broadcast %cst_10 : f32 to vector<64x128xf32>
    %14 = arith.maximumf %12, %13 : vector<64x128xf32>
    %15 = arith.truncf %14 : vector<64x128xf32> to vector<64x128xbf16>
    %c0_11 = arith.constant 0 : index
    %c0_12 = arith.constant 0 : index
    %16 = vector.load %arg4[%c0_11, %c0_12] : memref<128x256xbf16, #tpu.memory_space<vmem>>, vector<128x256xbf16>
    %cst_13 = arith.constant dense<0.000000e+00> : vector<64x256xf32>
    %17 = tpu.matmul %15, %16, %cst_13 {dimension_numbers = #tpu.dot_dimension_numbers<[1], [0], [0], [1], [0, 0, 1, 1], [], []>} : vector<64x128xbf16>, vector<128x256xbf16>, vector<64x256xf32> -> vector<64x256xf32>
    %18 = vector.extract_strided_slice %17 {offsets = [0, 0], sizes = [64, 128], strides = [1, 1]} : vector<64x256xf32> to vector<64x128xf32>
    %19 = vector.extract_strided_slice %17 {offsets = [0, 128], sizes = [64, 128], strides = [1, 1]} : vector<64x256xf32> to vector<64x128xf32>
    %cst_14 = arith.constant dense<0.000000e+00> : vector<64x128xf32>
    %20 = tpu.matmul %0, %19, %cst_14 {dimension_numbers = #tpu.dot_dimension_numbers<[1], [0], [0], [1], [0, 0, 1, 1], [], []>} : vector<64x64xf32>, vector<64x128xf32>, vector<64x128xf32> -> vector<64x128xf32>
    %21 = arith.addf %18, %20 : vector<64x128xf32>
    %22 = vector.broadcast %4 : vector<1x128xf32> to vector<64x128xf32>
    %23 = arith.addf %21, %22 : vector<64x128xf32>
    %c0_15 = arith.constant 0 : index
    %c0_16 = arith.constant 0 : index
    %24 = vector.load %arg6[%c0_15, %c0_16] : memref<64x128xf32, #tpu.memory_space<vmem>>, vector<64x128xf32>
    tpu.vector_store %arg6[%c0_15, %c0_16], %23 {strides = array<i32>} : memref<64x128xf32, #tpu.memory_space<vmem>>, vector<64x128xf32>,
    %25 = vector.extract_strided_slice %23 {offsets = [0, 0], sizes = [8, 128], strides = [1, 1]} : vector<64x128xf32> to vector<8x128xf32>
    %26 = vector.extract_strided_slice %23 {offsets = [8, 0], sizes = [8, 128], strides = [1, 1]} : vector<64x128xf32> to vector<8x128xf32>
    %cst_17 = arith.constant dense<0.000000e+00> : vector<8x8xf32>
    %27 = tpu.matmul %25, %26, %cst_17 {dimension_numbers = #tpu.dot_dimension_numbers<[1], [1], [0], [0], [0, 0, 1, 0], [], []>} : vector<8x128xf32>, vector<8x128xf32>, vector<8x8xf32> -> vector<8x8xf32>
    %c0_18 = arith.constant 0 : index
    %c0_19 = arith.constant 0 : index
    %28 = vector.load %arg7[%c0_18, %c0_19] : memref<8x8xf32, #tpu.memory_space<vmem>>, vector<8x8xf32>
    tpu.vector_store %arg7[%c0_18, %c0_19], %27 {strides = array<i32>} : memref<8x8xf32, #tpu.memory_space<vmem>>, vector<8x8xf32>,
    return
  }
}

</mosaic_0001>

<bundles_post_ra>
// kernel: tpu_custom_call.1
= control target key start
LH: loop header
LB: loop body
LE: loop exit
PB: predicated region body
PF: predicated region fallthrough
CT: control target
= control target key end

     0   :  { %13 = vsyncpa [#allocation3], 0  ;;  %s1190_s0 = inlined_call_operand.vmem [shape: f32[64,64], index: 0, kind: input, shape index: {}]   ;;  %s1191_s1 = inlined_call_operand.vmem [shape: f32[64,32], index: 1, kind: input, shape index: {}]   ;;  %s1192_s2 = inlined_call_operand.vmem [shape: bf16[32,256], index: 2, kind: input, shape index: {}]   ;;  %s1193_s3 = inlined_call_operand.vmem [shape: f32[1,128], index: 3, kind: input, shape index: {}]   ;;  %s1194_s4 = inlined_call_operand.hbm [shape: bf16[128,256], index: 4, kind: input, shape index: {}]   ;;  %s1195_s5 = inlined_call_operand.vmem [shape: f32[1,128], index: 5, kind: input, shape index: {}]   ;;  %s1196_s6 = inlined_call_operand.hbm [shape: f32[64,128], index: 6, kind: output, shape index: {0}]   ;;  %s1197_s7 = inlined_call_operand.hbm [shape: f32[8,8], index: 7, kind: output, shape index: {1}]  }
   0x1   :  { %14 = vsyncpa [#allocation4], 0 }
   0x2   :  { %15 = vsyncpa [#allocation7], 0  ;;  %s986_s24 = smov [#allocation2]  }
   0x3   :  { %s29_s25 = sshll.u32 %s986_s24, 4  ;;  %s30_s25 = int_to_ptr.vmem [resolvable:$true] %s29_s25 }
   0x4   :  { %s928_s26 = scalar_lea.vmem %s30_s25, 2048  ;;  %p933_p1 = scmp.lt.s32.totalorder %s30_s25, %s30_s25 }
   0x5   :  { %p929_p0 = scmp.ne.s32.totalorder %s30_s25, %s928_s26  ;;  %p934_p2 = scmp.lt.s32.totalorder %s928_s26, %s928_s26 }
   0x7   :  { %p935_p3 = por %p934_p2, %p933_p1 }
   0x9   :  { %p936_p4 = pnand %p935_p3, %p929_p0 }
   0xb   :  { %939 = shalt.err (!%p936_p4)
}
   0xc   :  { %s987_s27 = smov 128   ;;  %s988_s28 = smov 8  }
   0xd   :  { %35 = dma.hbm_to_vmem [thread:$0]  %s1194_s4, 2048, %s30_s25, [#allocation3], %s987_s27, %s987_s27, %s988_s28  }
   0xe   :  { %980 = dma.done.wait [#allocation3], 2048  }
   0xf   :  { %981 = vsyncadd [#allocation3], 4294965248  ;;  %v989_v0 = vmov 0   ;;  %v890_v1 = vld [vmem:[%s1192_s2 + $0x14] ss:$8 sps:$4 sm:$0xff]   ;;  %v50_v5 = vld [vmem:[%s1191_s1] sm:$0xff] }
  0x10   :  { %133 = vmatprep.mubr.bf16.mxu0 %v989_v0  ;;  %v892_v2 = vld [vmem:[%s1192_s2 + $0x10] ss:$8 sps:$4 sm:$0xff]   ;;  %113 = vmatprep.subr.bf16.mxu0 %v890_v1  ;;  %v893_v3 = vld [vmem:[%s1192_s2 + $0x4] ss:$8 sps:$4 sm:$0xff]   ;;  %v895_v4 = vld [vmem:[%s1192_s2] ss:$8 sps:$4 sm:$0xff]  }
  0x11   :  { %114 = vmatpush1.bf16.msra.mxu0 %v892_v2  ;;  %v51_v6 = vld [vmem:[%s1191_s1 + $0x8] sm:$0xff]  ;;  %vm88_vm0 = vcmask 261120   ;;  %v52_v8 = vld [vmem:[%s1191_s1 + $0x10] sm:$0xff]  ;;  %v53_v9 = vld [vmem:[%s1191_s1 + $0x18] sm:$0xff]  ;;  %vm174_vm1 = vcmask 523264   ;;  %vm991_vm2 = vmmov 0  }
  0x12   :  { %115 = vmatprep.subr.bf16.mxu0 %v893_v3  ;;  %v58_v7 = vpack.c.bf16 %v51_v6, %v50_v5  ;;  %v59_v10 = vpack.c.bf16 %v53_v9, %v52_v8  ;;  %v54_v11 = vld [vmem:[%s1191_s1 + $0x20] sm:$0xff]  ;;  %v55_v12 = vld [vmem:[%s1191_s1 + $0x28] sm:$0xff]  ;;  %v56_v14 = vld [vmem:[%s1191_s1 + $0x30] sm:$0xff] }
  0x13   :  { %v60_v13 = vpack.c.bf16 %v55_v12, %v54_v11  ;;  %v57_v15 = vld [vmem:[%s1191_s1 + $0x38] sm:$0xff]  ;;  %v1088_v17 = vld [vmem:[%s1190_s0] sm:$0xff]  ;;  %v1105_v46 = vld [vmem:[%s1190_s0 + $0x8] sm:$0xff] }
  0x14   :  { %v61_v16 = vpack.c.bf16 %v57_v15, %v56_v14  ;;  %837 = vmatprep.mubr.msk.f32.mxu1 %vm174_vm1, %v1088_v17  ;;  %v896_v18 = vld [vmem:[#allocation2 + $0x70] ss:$8 sps:$4 sm:$0xff]   ;;  %v898_v19 = vld [vmem:[#allocation2 + $0x74] ss:$8 sps:$4 sm:$0xff]   ;;  %v901_v20 = vld [vmem:[#allocation2 + $0x64] ss:$8 sps:$4 sm:$0xff]  }
  0x15   :  { %116 = vmatpush1.bf16.msra.mxu0 %v895_v4  ;;  %v899_v21 = vld [vmem:[#allocation2 + $0x60] ss:$8 sps:$4 sm:$0xff]   ;;  %v904_v22 = vld [vmem:[#allocation2 + $0x54] ss:$8 sps:$4 sm:$0xff]   ;;  %v902_v23 = vld [vmem:[#allocation2 + $0x50] ss:$8 sps:$4 sm:$0xff]  }
  0x16   :  { %434 = vmatprep.subr.bf16.mxu0 %v898_v19  ;;  %v907_v24 = vld [vmem:[#allocation2 + $0x44] ss:$8 sps:$4 sm:$0xff]   ;;  %v905_v25 = vld [vmem:[#allocation2 + $0x40] ss:$8 sps:$4 sm:$0xff]   ;;  %v910_v26 = vld [vmem:[#allocation2 + $0x34] ss:$8 sps:$4 sm:$0xff]  }
  0x17   :  { %v908_v27 = vld [vmem:[#allocation2 + $0x30] ss:$8 sps:$4 sm:$0xff]   ;;  %v913_v28 = vld [vmem:[#allocation2 + $0x24] ss:$8 sps:$4 sm:$0xff]   ;;  %v911_v29 = vld [vmem:[#allocation2 + $0x20] ss:$8 sps:$4 sm:$0xff]  }
  0x18   :  { %749 = vmatmul.mubr.msk.bf16.vlgmr.msra.gmra.mxu0 %vm88_vm0, %v58_v7  ;;  %v1110_v47 = vld [vmem:[%s1190_s0 + $0x10] sm:$0xff]  ;;  %v1119_v48 = vld [vmem:[%s1190_s0 + $0x18] sm:$0xff]  ;;  %v1124_v49 = vld [vmem:[%s1190_s0 + $0x20] sm:$0xff] }
  0x19   :  { %143 = vmatprep.mubr.bf16.mxu0 %v989_v0  ;;  %435 = vmatpush1.bf16.msra.mxu0 %v896_v18  ;;  %v1133_v50 = vld [vmem:[%s1190_s0 + $0x28] sm:$0xff]  ;;  %v1138_v51 = vld [vmem:[%s1190_s0 + $0x30] sm:$0xff]  ;;  %v1147_v52 = vld [vmem:[%s1190_s0 + $0x38] sm:$0xff] }
  0x1a   :  { %436 = vmatprep.subr.bf16.mxu0 %v901_v20  ;;  %v916_v53 = vld [vmem:[#allocation2 + $0x14] ss:$8 sps:$4 sm:$0xff]   ;;  %v914_v54 = vld [vmem:[#allocation2 + $0x10] ss:$8 sps:$4 sm:$0xff]   ;;  %v919_v55 = vld [vmem:[#allocation2 + $0x4] ss:$8 sps:$4 sm:$0xff]  }
  0x1b   :  { %v917_v56 = vld [vmem:[#allocation2] ss:$8 sps:$4 sm:$0xff]  }
  0x1c   :  { %v761_v57 = vld [vmem:[%s1193_s3] ss:$0 sm:$0xff] }
  0x1d   :  { %437 = vmatpush1.bf16.msra.mxu0 %v899_v21 }
  0x1e   :  { %438 = vmatprep.subr.bf16.mxu0 %v904_v22 }
  0x20   :  { %750 = vmatmul.mubr.msk.bf16.gmra.mxu0 %vm88_vm0, %v59_v10 }
  0x21   :  { %153 = vmatprep.mubr.bf16.mxu0 %v989_v0  ;;  %439 = vmatpush1.bf16.msra.mxu0 %v902_v23 }
  0x22   :  { %440 = vmatprep.subr.bf16.mxu0 %v907_v24 }
  0x25   :  { %441 = vmatpush1.bf16.msra.mxu0 %v905_v25 }
  0x26   :  { %442 = vmatprep.subr.bf16.mxu0 %v910_v26 }
  0x28   :  { %751 = vmatmul.mubr.msk.bf16.gmra.mxu0 %vm88_vm0, %v60_v13 }
  0x29   :  { %163 = vmatprep.mubr.bf16.mxu0 %v989_v0  ;;  %443 = vmatpush1.bf16.msra.mxu0 %v908_v27 }
  0x2a   :  { %444 = vmatprep.subr.bf16.mxu0 %v913_v28 }
  0x2d   :  { %445 = vmatpush1.bf16.msra.mxu0 %v911_v29 }
  0x2e   :  { %446 = vmatprep.subr.bf16.mxu0 %v916_v53  ;;  %v990_v53 = vmov 0.0  }
  0x30   :  { %752 = vmatmul.mubr.msk.bf16.gmra.mxu0 %vm88_vm0, %v61_v16 }
  0x31   :  { %466 = vmatprep.mubr.bf16.mxu0 %v989_v0  ;;  %447 = vmatpush1.bf16.msra.mxu0 %v914_v54 }
  0x32   :  { %448 = vmatprep.subr.bf16.mxu0 %v919_v55 }
  0x35   :  { %449 = vmatpush1.bf16.msra.mxu0 %v917_v56 }
  0xd8   :  { %v135_v30 = vpop.f32.mrf.mxu0 }
  0xda   :  { %v137_v31 = vpop.f32.mrf.mxu0 }
  0xdc   :  { %v139_v32 = vpop.f32.mrf.mxu0 }
  0xde   :  { %v141_v33 = vpop.f32.mrf.mxu0 }
  0xe0   :  { %v1092_v34 = vpop.f32.mrf.mxu0 }
  0xe2   :  { %v147_v35 = vpop.f32.mrf.mxu0 }
  0xe4   :  { %v149_v36 = vpop.f32.mrf.mxu0 }
  0xe6   :  { %v151_v37 = vpop.f32.mrf.mxu0 }
  0xe8   :  { %v1094_v38 = vpop.f32.mrf.mxu0 }
  0xea   :  { %v157_v39 = vpop.f32.mrf.mxu0 }
  0xec   :  { %v1096_v40 = vpop.f32.mrf.mxu0 }
  0xee   :  { %v161_v41 = vpop.f32.mrf.mxu0 }
  0xf0   :  { %v1098_v42 = vpop.f32.mrf.mxu0 }
  0xf2   :  { %v167_v43 = vpop.f32.mrf.mxu0 }
  0xf4   :  { %v1100_v44 = vpop.f32.mrf.mxu0 }
  0xf6   :  { %v171_v45 = vpop.f32.mrf.mxu0 }
  0xf7   :  { %821 = vmatprep.subr.mxu1 %v171_v45 }
  0xf8   :  { %822 = vmatpush3.msra.mxu1 %v171_v45 }
  0xf9   :  { %823 = vmatprep.subr.mxu1 %v167_v43 }
  0xfa   :  { %824 = vmatpush3.msra.mxu1 %v167_v43 }
  0xfb   :  { %825 = vmatprep.subr.mxu1 %v161_v41 }
  0xfc   :  { %826 = vmatpush3.msra.mxu1 %v161_v41 }
  0xfd   :  { %827 = vmatprep.subr.mxu1 %v157_v39 }
  0xfe   :  { %828 = vmatpush3.msra.mxu1 %v157_v39 }
  0xff   :  { %829 = vmatprep.subr.mxu1 %v151_v37 }
 0x100   :  { %830 = vmatpush3.msra.mxu1 %v151_v37 }
 0x101   :  { %831 = vmatprep.subr.mxu1 %v147_v35 }
 0x102   :  { %832 = vmatpush3.msra.mxu1 %v147_v35 }
 0x103   :  { %833 = vmatprep.subr.mxu1 %v141_v33 }
 0x104   :  { %834 = vmatpush3.msra.mxu1 %v141_v33 }
 0x105   :  { %835 = vmatprep.subr.mxu1 %v137_v31 }
 0x106   :  { %836 = vmatpush3.msra.mxu1 %v137_v31 }
 0x107   :  { %838 = vmatmul.mubr.msk.f32.vlgmr.msra.gmra.mxu1 %vm174_vm1, %v1105_v46 }
 0x108   :  { %840 = vmatprep.mubr.msk.f32.mxu1 %vm174_vm1, %v1110_v47 }
 0x10b   :  { %841 = vmatmul.mubr.msk.f32.gmra.mxu1 %vm174_vm1, %v1119_v48 }
 0x10c   :  { %843 = vmatprep.mubr.msk.f32.mxu1 %vm174_vm1, %v1124_v49 }
 0x10f   :  { %844 = vmatmul.mubr.msk.f32.gmra.mxu1 %vm174_vm1, %v1133_v50 }
 0x110   :  { %846 = vmatprep.mubr.msk.f32.mxu1 %vm174_vm1, %v1138_v51 }
 0x113   :  { %847 = vmatmul.mubr.msk.f32.gmra.mxu1 %vm174_vm1, %v1147_v52 }
 0x114   :  { %865 = vmatprep.mubr.msk.f32.mxu1 %vm174_vm1, %v1088_v17 }
 0x1c7   :  { %v839_v58 = vpop.f32.mrf.mxu1 }
 0x1c8   :  { %v305_v59 = vadd.f32 %v839_v58, %v139_v32 }
 0x1c9   :  { %v265_v60 = vpop.f32.mrf.mxu1 }
 0x1ca   :  { %v319_v61 = vadd.f32 %v761_v57, %v305_v59  ;;  %v304_v62 = vadd.f32 %v265_v60, %v135_v30 }
 0x1cb   :  { %v842_v63 = vpop.f32.mrf.mxu1 }
 0x1cc   :  { %v318_v1 = vadd.f32 %v761_v57, %v304_v62  ;;  %v327_v3 = vmax.f32 %v319_v61, 0.0  ;;  %v307_v5 = vadd.f32 %v842_v63, %v149_v36 }
 0x1cd   :  { %v275_v2 = vpop.f32.mrf.mxu1 }
 0x1ce   :  { %v326_v4 = vmax.f32 %v318_v1, 0.0  ;;  %v306_v6 = vadd.f32 %v275_v2, %v1092_v34  ;;  %v321_v11 = vadd.f32 %v761_v57, %v307_v5 }
 0x1cf   :  { %v845_v7 = vpop.f32.mrf.mxu1 }
 0x1d0   :  { %v334_v8 = vpack.c.bf16 %v327_v3, %v326_v4  ;;  %v320_v9 = vadd.f32 %v761_v57, %v306_v6  ;;  %v329_v15 = vmax.f32 %v321_v11, 0.0  ;;  %v309_v16 = vadd.f32 %v845_v7, %v1096_v40 }
 0x1d1   :  { %v285_v10 = vpop.f32.mrf.mxu1 }
 0x1d2   :  { %467 = vmatmul.mubr.bf16.vlgmr.msra.gmra.mxu0 %v334_v8  ;;  %v328_v12 = vmax.f32 %v320_v9, 0.0  ;;  %v308_v13 = vadd.f32 %v285_v10, %v1094_v38  ;;  %v323_v20 = vadd.f32 %v761_v57, %v309_v16 }
 0x1d3   :  { %476 = vmatprep.mubr.bf16.mxu0 %v989_v0  ;;  %v848_v14 = vpop.f32.mrf.mxu1 }
 0x1d4   :  { %v322_v17 = vadd.f32 %v761_v57, %v308_v13  ;;  %v335_v18 = vpack.c.bf16 %v329_v15, %v328_v12  ;;  %v331_v23 = vmax.f32 %v323_v20, 0.0  ;;  %v311_v24 = vadd.f32 %v848_v14, %v1100_v44 }
 0x1d5   :  { %v295_v19 = vpop.f32.mrf.mxu1 }
 0x1d6   :  { %v330_v21 = vmax.f32 %v322_v17, 0.0  ;;  %v310_v22 = vadd.f32 %v295_v19, %v1098_v42  ;;  %v325_v27 = vadd.f32 %v761_v57, %v311_v24 }
 0x1d8   :  { %v324_v25 = vadd.f32 %v761_v57, %v310_v22  ;;  %v336_v26 = vpack.c.bf16 %v331_v23, %v330_v21  ;;  %v333_v29 = vmax.f32 %v325_v27, 0.0 }
 0x1da   :  { %477 = vmatmul.mubr.bf16.gmra.mxu0 %v335_v18  ;;  %v332_v28 = vmax.f32 %v324_v25, 0.0 }
 0x1db   :  { %486 = vmatprep.mubr.bf16.mxu0 %v989_v0 }
 0x1dc   :  { %v337_v30 = vpack.c.bf16 %v333_v29, %v332_v28 }
 0x1e2   :  { %487 = vmatmul.mubr.bf16.gmra.mxu0 %v336_v26 }
 0x1e3   :  { %496 = vmatprep.mubr.bf16.mxu0 %v989_v0 }
 0x1ea   :  { %497 = vmatmul.mubr.bf16.gmra.mxu0 %v337_v30 }
 0x292   :  { %v468_v31 = vpop.f32.mrf.mxu0 }
 0x294   :  { %v470_v32 = vpop.f32.mrf.mxu0 }
 0x296   :  { %v472_v33 = vpop.f32.mrf.mxu0 }
 0x298   :  { %v474_v34 = vpop.f32.mrf.mxu0 }
 0x29a   :  { %v478_v35 = vpop.f32.mrf.mxu0 }
 0x29c   :  { %v480_v36 = vpop.f32.mrf.mxu0 }
 0x29e   :  { %v482_v37 = vpop.f32.mrf.mxu0 }
 0x2a0   :  { %v484_v38 = vpop.f32.mrf.mxu0 }
 0x2a2   :  { %v488_v39 = vpop.f32.mrf.mxu0 }
 0x2a4   :  { %v490_v40 = vpop.f32.mrf.mxu0 }
 0x2a6   :  { %v492_v41 = vpop.f32.mrf.mxu0 }
 0x2a8   :  { %v494_v42 = vpop.f32.mrf.mxu0 }
 0x2aa   :  { %v498_v43 = vpop.f32.mrf.mxu0 }
 0x2ac   :  { %v500_v44 = vpop.f32.mrf.mxu0 }
 0x2ae   :  { %v502_v45 = vpop.f32.mrf.mxu0 }
 0x2b0   :  { %v504_v0 = vpop.f32.mrf.mxu0 }
 0x2b1   :  { %849 = vmatprep.subr.mxu1 %v504_v0 }
 0x2b2   :  { %850 = vmatpush3.msra.mxu1 %v504_v0 }
 0x2b3   :  { %851 = vmatprep.subr.mxu1 %v500_v44 }
 0x2b4   :  { %852 = vmatpush3.msra.mxu1 %v500_v44 }
 0x2b5   :  { %853 = vmatprep.subr.mxu1 %v494_v42 }
 0x2b6   :  { %854 = vmatpush3.msra.mxu1 %v494_v42 }
 0x2b7   :  { %855 = vmatprep.subr.mxu1 %v490_v40 }
 0x2b8   :  { %856 = vmatpush3.msra.mxu1 %v490_v40 }
 0x2b9   :  { %857 = vmatprep.subr.mxu1 %v484_v38 }
 0x2ba   :  { %858 = vmatpush3.msra.mxu1 %v484_v38 }
 0x2bb   :  { %859 = vmatprep.subr.mxu1 %v480_v36 }
 0x2bc   :  { %860 = vmatpush3.msra.mxu1 %v480_v36 }
 0x2bd   :  { %861 = vmatprep.subr.mxu1 %v474_v34 }
 0x2be   :  { %862 = vmatpush3.msra.mxu1 %v474_v34 }
 0x2bf   :  { %863 = vmatprep.subr.mxu1 %v470_v32 }
 0x2c0   :  { %864 = vmatpush3.msra.mxu1 %v470_v32 }
 0x2c1   :  { %866 = vmatmul.mubr.msk.f32.vlgmr.msra.gmra.mxu1 %vm174_vm1, %v1105_v46  ;;  %877 = vmatprep.subr.mxu1 %v990_v53  ;;  %v786_v46 = vld [vmem:[%s1195_s5] ss:$0 sm:$0xff]  ;;  %s992_s5 = smov [#allocation5]  }
 0x2c2   :  { %868 = vmatprep.mubr.msk.f32.mxu1 %vm174_vm1, %v1110_v47  ;;  %s719_s24 = sshll.u32 %s992_s5, 4  ;;  %s720_s24 = int_to_ptr.vmem [resolvable:$true] %s719_s24 }
 0x2c3   :  { %s940_s25 = scalar_lea.vmem %s720_s24, 1024  ;;  %p945_p6 = scmp.lt.s32.totalorder %s720_s24, %s720_s24 }
 0x2c4   :  { %p941_p5 = scmp.ne.s32.totalorder %s720_s24, %s940_s25  ;;  %p946_p7 = scmp.lt.s32.totalorder %s940_s25, %s940_s25 }
 0x2c5   :  { %869 = vmatmul.mubr.msk.f32.gmra.mxu1 %vm174_vm1, %v1119_v48 }
 0x2c6   :  { %871 = vmatprep.mubr.msk.f32.mxu1 %vm174_vm1, %v1124_v49  ;;  %p947_p8 = por %p946_p7, %p945_p6 }
 0x2c8   :  { %p948_p9 = pnand %p947_p8, %p941_p5 }
 0x2c9   :  { %872 = vmatmul.mubr.msk.f32.gmra.mxu1 %vm174_vm1, %v1133_v50 }
 0x2ca   :  { %874 = vmatprep.mubr.msk.f32.mxu1 %vm174_vm1, %v1138_v51 }
 0x2cd   :  { %875 = vmatmul.mubr.msk.f32.gmra.mxu1 %vm174_vm1, %v1147_v52 }
 0x2ce   :  { %879 = vmatprep.mubr.msk.f32.mxu1 %vm991_vm2, %v990_v53 }
 0x381   :  { %v867_v47 = vpop.f32.mrf.mxu1 }
 0x382   :  { %v613_v48 = vadd.f32 %v867_v47, %v472_v33 }
 0x383   :  { %v573_v49 = vpop.f32.mrf.mxu1 }
 0x384   :  { %v627_v54 = vadd.f32 %v786_v46, %v613_v48  ;;  %v612_v55 = vadd.f32 %v573_v49, %v468_v31 }
 0x385   :  { %v870_v50 = vpop.f32.mrf.mxu1 }
 0x386   :  { %635 = vst [vmem:[#allocation5 + $0x8] sm:$0xff] %v627_v54  ;;  %v626_v56 = vadd.f32 %v786_v46, %v612_v55  ;;  %v615_v51 = vadd.f32 %v870_v50, %v482_v37  ;;  %878 = vmatpush3.xpose.msra.mxu1 %v627_v54 }
 0x387   :  { %v583_v57 = vpop.f32.mrf.mxu1 }
 0x388   :  { %634 = vst [vmem:[#allocation5] sm:$0xff] %v626_v56  ;;  %v629_v52 = vadd.f32 %v786_v46, %v615_v51  ;;  %v614_v58 = vadd.f32 %v583_v57, %v478_v35 }
 0x389   :  { %v873_v59 = vpop.f32.mrf.mxu1  ;;  %880 = vmatmul.mubr.f32.vlgmr.msra.gmra.mxu1 %v626_v56 }
 0x38a   :  { %637 = vst [vmem:[#allocation5 + $0x18] sm:$0xff] %v629_v52  ;;  %v628_v60 = vadd.f32 %v786_v46, %v614_v58  ;;  %v617_v61 = vadd.f32 %v873_v59, %v492_v41 }
 0x38b   :  { %v593_v62 = vpop.f32.mrf.mxu1 }
 0x38c   :  { %636 = vst [vmem:[#allocation5 + $0x10] sm:$0xff] %v628_v60  ;;  %v631_v63 = vadd.f32 %v786_v46, %v617_v61  ;;  %v616_v1 = vadd.f32 %v593_v62, %v488_v39 }
 0x38d   :  { %v876_v2 = vpop.f32.mrf.mxu1 }
 0x38e   :  { %639 = vst [vmem:[#allocation5 + $0x28] sm:$0xff] %v631_v63  ;;  %v630_v3 = vadd.f32 %v786_v46, %v616_v1  ;;  %v619_v4 = vadd.f32 %v876_v2, %v502_v45 }
 0x38f   :  { %v603_v5 = vpop.f32.mrf.mxu1 }
 0x390   :  { %638 = vst [vmem:[#allocation5 + $0x20] sm:$0xff] %v630_v3  ;;  %v633_v6 = vadd.f32 %v786_v46, %v619_v4  ;;  %v618_v7 = vadd.f32 %v603_v5, %v498_v43 }
 0x392   :  { %641 = vst [vmem:[#allocation5 + $0x38] sm:$0xff] %v633_v6  ;;  %v632_v8 = vadd.f32 %v786_v46, %v618_v7 }
 0x394   :  { %640 = vst [vmem:[#allocation5 + $0x30] sm:$0xff] %v632_v8 }
 0x395   :  { %951 = shalt.err (!%p948_p9)
}
 0x396   :  { %725 = dma.vmem_to_hbm [thread:$0]  %s720_s24, 1024, %s1196_s6, [#allocation4], %s987_s27, %s987_s27, %s988_s28   ;;  %vm712_vm3 = vcmask 64512  }
 0x397   :  { %s993_s30 = smov [#allocation6]  }
 0x398   :  { %s732_s8 = sshll.u32 %s993_s30, 4  ;;  %s733_s8 = int_to_ptr.vmem [resolvable:$true] %s732_s8 }
 0x399   :  { %s960_s9 = scalar_lea.vmem %s733_s8, 128  ;;  %p965_p11 = scmp.lt.s32.totalorder %s733_s8, %s733_s8 }
 0x39a   :  { %p961_p10 = scmp.ne.s32.totalorder %s733_s8, %s960_s9  ;;  %p966_p12 = scmp.lt.s32.totalorder %s960_s9, %s960_s9 }
 0x39c   :  { %p967_p13 = por %p966_p12, %p965_p11 }
 0x39e   :  { %p968_p0 = pnand %p967_p13, %p961_p10 }
 0x449   :  { %v708_v9 = vpop.f32.mrf.mxu1 }
 0x44a   :  { %713 = vst.msk [vmem:[#allocation6] sm:$0xff] %vm712_vm3, %v708_v9 }
 0x44b   :  { %v881_v10 = vpop.f32.mrf.mxu1 }
 0x44c   :  { %971 = shalt.err (!%p968_p0)
}
 0x44d   :  { %735 = dma.vmem_to_hbm [thread:$0]  %s733_s8, 128, %s1197_s7, [#allocation7]  }
 0x44e   :  { %982 = dma.done.wait [#allocation4], 1024  }
 0x44f   :  { %983 = vsyncadd [#allocation4], 4294966272 }
 0x450   :  { %984 = dma.done.wait [#allocation7], 128  }
 0x451   :  { %985 = vsyncadd [#allocation7], 4294967168 }
 0x452   :  { %742 = vsyncpa [#allocation3], 1 }
 0x453   :  { %743 = vsyncpa [#allocation4], 1 }
 0x454   :  { %744 = vsyncpa [#allocation7], 1 }

</bundles_post_ra>
